<compile_context>
chip_gen: v7x
topology: tpu7x:2x2x1
jax: 0.10.0
libtpu: 0.0.40
codegen_flags: <defaults>
</compile_context>

<pallas_src>
import jax
import jax.numpy as jnp
from jax.experimental import pallas as pl
from jax.experimental.pallas import tpu as pltpu

NUM_HEADS = 2  # translation head + rotation head


# ------------------------- exact GELU (erf) helpers ---------------------------
def _erf_approx(x):
    # Abramowitz & Stegun 7.1.26 rational approximation, |abs err| < 1.5e-7.
    # Only uses mul/add/div/exp/compare/select -> guaranteed Mosaic lowering.
    a1, a2, a3, a4, a5 = (0.254829592, -0.284496736, 1.421413741,
                          -1.453152027, 1.061405429)
    p = 0.3275911
    sign = jnp.where(x >= 0.0, 1.0, -1.0)
    ax = jnp.abs(x)
    t = 1.0 / (1.0 + p * ax)
    poly = ((((a5 * t + a4) * t + a3) * t + a2) * t + a1) * t
    return sign * (1.0 - poly * jnp.exp(-ax * ax))


def _gelu_exact(x):
    # PyTorch F.gelu default (erf formulation).
    return 0.5 * x * (1.0 + _erf_approx(x * 0.7071067811865476))


# ----------------------------- Pallas kernel ----------------------------------
def _tnet_heads_kernel(xt_ref, xr_ref, w1_ref, b1_ref, w2t_ref, b2_ref, o_ref):
    # Per-head block (head axis squeezed; one head per grid step, sharded
    # across TensorCores on v7x via "parallel" semantics):
    #   xt/xr: [B, D]    f32     w1:  [D, CH]    bf16    b1: [1, CH]   f32
    #   w2t:   [OPAD,CH] bf16 (fc_o^T, rows >= output_dim are zero)
    #   b2:    [1, OPAD] f32     o:   [B, OPAD]  f32
    # Head 0 = translation (desc_t), head 1 = rotation (desc_rot); select the
    # input with an arithmetic blend of the 0/1 program id (no bool broadcast).
    w_rot = pl.program_id(0).astype(jnp.float32)            # 0.0 or 1.0
    x = (1.0 - w_rot) * xt_ref[...] + w_rot * xr_ref[...]   # [B, D] f32

    # fc_h: bf16 MXU matmul, f32 accumulate, f32 bias, exact-erf GELU in f32.
    h = jnp.dot(x.astype(jnp.bfloat16), w1_ref[...],
                preferred_element_type=jnp.float32) + b1_ref[...]
    h = _gelu_exact(h)

    # fc_o: contract over CH against the transposed weight (q @ k^T pattern);
    # keep h in f32 — matmul is tiny and this avoids a second truncation.
    y = jax.lax.dot_general(
        h, w2t_ref[...].astype(jnp.float32),
        dimension_numbers=(((1,), (1,)), ((), ())),
        preferred_element_type=jnp.float32) + b2_ref[...]
    o_ref[...] = y


# -------------------------------- wrapper --------------------------------------
def tnet_forward_heads(desc_t, desc_rot, params):
    """Equivalent of TNet.forward_heads: both PoseRegressor heads + concat."""
    B, D = desc_t.shape
    output_dim = params["output_dim"]
    w1, b1 = params["w1"], params["b1"]          # [2, D, CH] bf16 / [2, 1, CH] f32
    w2t, b2 = params["w2t"], params["b2"]        # [2, OPAD, CH] bf16 / [2,1,OPAD] f32
    CH = w1.shape[-1]
    OPAD = w2t.shape[1]

    cost = pl.CostEstimate(
        flops=2 * NUM_HEADS * B * (D * CH + CH * OPAD),
        transcendentals=NUM_HEADS * B * CH,          # exp inside the erf GELU
        bytes_accessed=int(NUM_HEADS * B * D * 4 + w1.size * 2 + w2t.size * 2
                           + b1.size * 4 + b2.size * 4 + NUM_HEADS * B * OPAD * 4),
    )

    out = pl.pallas_call(
        _tnet_heads_kernel,
        out_shape=jax.ShapeDtypeStruct((NUM_HEADS, B, OPAD), jnp.float32),
        grid=(NUM_HEADS,),
        in_specs=[
            pl.BlockSpec((B, D), lambda h: (0, 0)),                   # desc_t
            pl.BlockSpec((B, D), lambda h: (0, 0)),                   # desc_rot
            pl.BlockSpec((pl.Squeezed(), D, CH),    lambda h: (h, 0, 0)),
            pl.BlockSpec((pl.Squeezed(), 1, CH),    lambda h: (h, 0, 0)),
            pl.BlockSpec((pl.Squeezed(), OPAD, CH), lambda h: (h, 0, 0)),
            pl.BlockSpec((pl.Squeezed(), 1, OPAD),  lambda h: (h, 0, 0)),
        ],
        # Independent per-head output blocks -> head axis is truly parallel
        # (uses both TensorCores on v7x; a wash on single-TC v5e/v6e).
        out_specs=pl.BlockSpec((pl.Squeezed(), B, OPAD), lambda h: (h, 0, 0)),
        compiler_params=pltpu.CompilerParams(
            dimension_semantics=("parallel",)),
        cost_estimate=cost,
    )(desc_t, desc_rot, w1, b1, w2t, b2)

    # torch.cat((x_t, x_rot), dim=1): two tiny slices + one concat.
    return jnp.concatenate([out[0, :, :output_dim],
                            out[1, :, :output_dim]], axis=1)


# ---------------------------- parameter helpers --------------------------------
def _xavier_uniform(key, fan_in, fan_out):
    bound = jnp.sqrt(6.0 / (fan_in + fan_out))
    return jax.random.uniform(key, (fan_in, fan_out), jnp.float32,
                              minval=-bound, maxval=bound)


def _linear_bias(key, fan_in, fan_out):
    # PyTorch nn.Linear default bias init: U(-1/sqrt(fan_in), 1/sqrt(fan_in))
    bound = 1.0 / jnp.sqrt(fan_in)
    return jax.random.uniform(key, (1, fan_out), jnp.float32,
                              minval=-bound, maxval=bound)


def make_tnet_head_params(key, decoder_dim, output_dim, ch=1024, opad=8):
    """Both PoseRegressor heads, stacked on a leading head axis.

    All weight prep happens here, ONCE (not per forward):
      * w1 stored bf16 as fc_h.weight^T  -> [NUM_HEADS, D, CH]
      * fc_o stored bf16, TRANSPOSED and sublane-padded to `opad` rows
        (rows >= output_dim are zero)    -> [NUM_HEADS, opad, CH] (lane-dense)
      * biases stay f32.
    """
    assert output_dim <= opad
    keys = jax.random.split(key, 4 * NUM_HEADS)
    w1, b1, w2t, b2 = [], [], [], []
    for h in range(NUM_HEADS):
        k1, k2, k3, k4 = keys[4 * h: 4 * h + 4]
        w1.append(_xavier_uniform(k1, decoder_dim, ch))        # fc_h.weight^T
        b1.append(_linear_bias(k2, decoder_dim, ch))           # fc_h.bias
        w2_small = _xavier_uniform(k3, ch, output_dim)         # fc_o.weight^T
        b2_small = _linear_bias(k4, ch, output_dim)            # fc_o.bias
        w2t.append(jnp.zeros((opad, ch), jnp.float32)
                   .at[:output_dim, :].set(w2_small.T))
        b2.append(jnp.zeros((1, opad), jnp.float32)
                  .at[:, :output_dim].set(b2_small))
    return dict(
        w1=jnp.stack(w1).astype(jnp.bfloat16),    # [2, D, CH]    bf16
        b1=jnp.stack(b1),                         # [2, 1, CH]    f32
        w2t=jnp.stack(w2t).astype(jnp.bfloat16),  # [2, OPAD, CH] bf16
        b2=jnp.stack(b2),                         # [2, 1, OPAD]  f32
        output_dim=output_dim)


# -------------------------------- references ------------------------------------
def _ref_forward_heads_matched(desc_t, desc_rot, params):
    """Mirrors the kernel numerics (bf16 weights/inputs for fc_h, f32 fc_o)."""
    output_dim = params["output_dim"]
    outs = []
    for h, x in enumerate((desc_t, desc_rot)):
        hh = jnp.dot(x.astype(jnp.bfloat16), params["w1"][h],
                     preferred_element_type=jnp.float32) + params["b1"][h]
        hh = _gelu_exact(hh)
        w2 = params["w2t"][h].astype(jnp.float32)            # [OPAD, CH]
        y = jnp.dot(hh, w2.T, precision=jax.lax.Precision.HIGHEST) + params["b2"][h]
        outs.append(y[:, :output_dim])
    return jnp.concatenate(outs, axis=1)


def _ref_forward_heads_f32(desc_t, desc_rot, params):
    """PyTorch-semantics reference: f32 Linear -> exact(erf) GELU -> Linear, cat."""
    output_dim = params["output_dim"]
    outs = []
    for h, x in enumerate((desc_t, desc_rot)):
        w1 = params["w1"][h].astype(jnp.float32)
        w2 = params["w2t"][h].astype(jnp.float32).T[:, :output_dim]
        b2 = params["b2"][h][:, :output_dim]
        hh = jnp.dot(x, w1, precision=jax.lax.Precision.HIGHEST) + params["b1"][h]
        hh = jax.nn.gelu(hh, approximate=False)
        outs.append(jnp.dot(hh, w2, precision=jax.lax.Precision.HIGHEST) + b2)
    return jnp.concatenate(outs, axis=1)


# ----------------------------------- main ----------------------------------------
if __name__ == "__main__":
    B = 2             # batch
    decoder_dim = 32  # transformer hidden_dim (small synthetic choice)
    output_dim = 3    # translation / rotation components

    key = jax.random.PRNGKey(0)
    k_desc_t, k_desc_rot, k_params = jax.random.split(key, 3)

    # synthetic transformer descriptors (what forward_transformers would emit)
    desc_t = jax.random.normal(k_desc_t, (B, decoder_dim), jnp.float32)
    desc_rot = jax.random.normal(k_desc_rot, (B, decoder_dim), jnp.float32)

    params = make_tnet_head_params(k_params, decoder_dim, output_dim)

    out = tnet_forward_heads(desc_t, desc_rot, params)
    out = jax.block_until_ready(out)

    assert out.shape == (B, NUM_HEADS * output_dim), out.shape

    ref_matched = _ref_forward_heads_matched(desc_t, desc_rot, params)
    ref_f32 = _ref_forward_heads_f32(desc_t, desc_rot, params)
    assert jnp.allclose(out, ref_matched, atol=2e-3, rtol=2e-3), \
        "mismatch vs precision-matched reference"
    assert jnp.allclose(out, ref_f32, atol=3e-2, rtol=3e-2), \
        "mismatch vs f32 reference"

    print("KERNEL_OK")
</pallas_src>

<mosaic_0001>
module attributes {stable_mosaic.version = 11 : i64} {
  func.func @_tnet_heads_kernel(%arg0: i32, %arg1: memref<2x32xf32, #tpu.memory_space<vmem>>, %arg2: memref<2x32xf32, #tpu.memory_space<vmem>>, %arg3: memref<1x32x1024xbf16, #tpu.memory_space<vmem>>, %arg4: memref<1x1x1024xf32, #tpu.memory_space<vmem>>, %arg5: memref<1x8x1024xbf16, #tpu.memory_space<vmem>>, %arg6: memref<1x1x8xf32, #tpu.memory_space<vmem>>, %arg7: memref<1x2x8xf32, #tpu.memory_space<vmem>>) attributes {dimension_semantics = [#tpu.dimension_semantics<parallel>], iteration_bounds = array<i64: 2>, scalar_prefetch = 0 : i64, scratch_operands = 0 : i64, tpu.core_type = #tpu.core_type<tc>, window_params = [{pipeline_mode = #tpu.pipeline_mode<synchronous>, transform_indices = @transform_0, window_bounds = array<i64: 2, 32>}, {pipeline_mode = #tpu.pipeline_mode<synchronous>, transform_indices = @transform_1, window_bounds = array<i64: 2, 32>}, {transform_indices = @transform_2, window_bounds = array<i64: 1, 32, 1024>}, {transform_indices = @transform_3, window_bounds = array<i64: 1, 1, 1024>}, {transform_indices = @transform_4, window_bounds = array<i64: 1, 8, 1024>}, {transform_indices = @transform_5, window_bounds = array<i64: 1, 1, 8>}, {transform_indices = @transform_6, window_bounds = array<i64: 1, 2, 8>}]} {
    %0 = arith.sitofp %arg0 : i32 to f32
    %cst = arith.constant 1.000000e+00 : f32
    %1 = arith.subf %cst, %0 : f32
    %c0 = arith.constant 0 : index
    %c0_0 = arith.constant 0 : index
    %2 = vector.load %arg1[%c0, %c0_0] : memref<2x32xf32, #tpu.memory_space<vmem>>, vector<2x32xf32>
    %3 = vector.broadcast %1 : f32 to vector<2x32xf32>
    %4 = arith.mulf %3, %2 : vector<2x32xf32>
    %c0_1 = arith.constant 0 : index
    %c0_2 = arith.constant 0 : index
    %5 = vector.load %arg2[%c0_1, %c0_2] : memref<2x32xf32, #tpu.memory_space<vmem>>, vector<2x32xf32>
    %6 = vector.broadcast %0 : f32 to vector<2x32xf32>
    %7 = arith.mulf %6, %5 : vector<2x32xf32>
    %8 = arith.addf %4, %7 : vector<2x32xf32>
    %9 = arith.truncf %8 : vector<2x32xf32> to vector<2x32xbf16>
    %c0_3 = arith.constant 0 : index
    %c0_4 = arith.constant 0 : index
    %c0_5 = arith.constant 0 : index
    %10 = vector.load %arg3[%c0_3, %c0_4, %c0_5] : memref<1x32x1024xbf16, #tpu.memory_space<vmem>>, vector<1x32x1024xbf16>
    %11 = vector.shape_cast %10 : vector<1x32x1024xbf16> to vector<32x1024xbf16>
    %cst_6 = arith.constant dense<0.000000e+00> : vector<2x1024xf32>
    %12 = tpu.matmul %9, %11, %cst_6 {dimension_numbers = #tpu.dot_dimension_numbers<[1], [0], [0], [1], [0, 0, 1, 1], [], []>} : vector<2x32xbf16>, vector<32x1024xbf16>, vector<2x1024xf32> -> vector<2x1024xf32>
    %c0_7 = arith.constant 0 : index
    %c0_8 = arith.constant 0 : index
    %c0_9 = arith.constant 0 : index
    %13 = vector.load %arg4[%c0_7, %c0_8, %c0_9] : memref<1x1x1024xf32, #tpu.memory_space<vmem>>, vector<1x1x1024xf32>
    %14 = vector.shape_cast %13 : vector<1x1x1024xf32> to vector<1x1024xf32>
    %15 = vector.broadcast %14 : vector<1x1024xf32> to vector<2x1024xf32>
    %16 = arith.addf %12, %15 : vector<2x1024xf32>
    %cst_10 = arith.constant 5.000000e-01 : f32
    %17 = vector.broadcast %cst_10 : f32 to vector<2x1024xf32>
    %18 = arith.mulf %17, %16 : vector<2x1024xf32>
    %cst_11 = arith.constant 0.707106769 : f32
    %19 = vector.broadcast %cst_11 : f32 to vector<2x1024xf32>
    %20 = arith.mulf %16, %19 : vector<2x1024xf32>
    %cst_12 = arith.constant 0.000000e+00 : f32
    %21 = vector.broadcast %cst_12 : f32 to vector<2x1024xf32>
    %22 = arith.cmpf oge, %20, %21 : vector<2x1024xf32>
    %cst_13 = arith.constant 1.000000e+00 : f32
    %cst_14 = arith.constant -1.000000e+00 : f32
    %23 = vector.broadcast %cst_13 : f32 to vector<2x1024xf32>
    %24 = vector.broadcast %cst_14 : f32 to vector<2x1024xf32>
    %25 = arith.select %22, %23, %24 : vector<2x1024xi1>, vector<2x1024xf32>
    %26 = math.absf %20 : vector<2x1024xf32>
    %cst_15 = arith.constant 0.327591091 : f32
    %27 = vector.broadcast %cst_15 : f32 to vector<2x1024xf32>
    %28 = arith.mulf %27, %26 : vector<2x1024xf32>
    %cst_16 = arith.constant 1.000000e+00 : f32
    %29 = vector.broadcast %cst_16 : f32 to vector<2x1024xf32>
    %30 = arith.addf %29, %28 : vector<2x1024xf32>
    %cst_17 = arith.constant 1.000000e+00 : f32
    %31 = vector.broadcast %cst_17 : f32 to vector<2x1024xf32>
    %32 = arith.divf %31, %30 : vector<2x1024xf32>
    %cst_18 = arith.constant 1.06140542 : f32
    %33 = vector.broadcast %cst_18 : f32 to vector<2x1024xf32>
    %34 = arith.mulf %33, %32 : vector<2x1024xf32>
    %cst_19 = arith.constant -1.45315206 : f32
    %35 = vector.broadcast %cst_19 : f32 to vector<2x1024xf32>
    %36 = arith.addf %34, %35 : vector<2x1024xf32>
    %37 = arith.mulf %36, %32 : vector<2x1024xf32>
    %cst_20 = arith.constant 1.42141378 : f32
    %38 = vector.broadcast %cst_20 : f32 to vector<2x1024xf32>
    %39 = arith.addf %37, %38 : vector<2x1024xf32>
    %40 = arith.mulf %39, %32 : vector<2x1024xf32>
    %cst_21 = arith.constant -0.284496725 : f32
    %41 = vector.broadcast %cst_21 : f32 to vector<2x1024xf32>
    %42 = arith.addf %40, %41 : vector<2x1024xf32>
    %43 = arith.mulf %42, %32 : vector<2x1024xf32>
    %cst_22 = arith.constant 0.254829586 : f32
    %44 = vector.broadcast %cst_22 : f32 to vector<2x1024xf32>
    %45 = arith.addf %43, %44 : vector<2x1024xf32>
    %46 = arith.mulf %45, %32 : vector<2x1024xf32>
    %cst_23 = arith.constant 0.000000e+00 : f32
    %47 = vector.broadcast %cst_23 : f32 to vector<2x1024xf32>
    %48 = arith.subf %47, %26 : vector<2x1024xf32>
    %49 = arith.mulf %48, %26 : vector<2x1024xf32>
    %50 = math.exp %49 : vector<2x1024xf32>
    %51 = arith.mulf %46, %50 : vector<2x1024xf32>
    %cst_24 = arith.constant 1.000000e+00 : f32
    %52 = vector.broadcast %cst_24 : f32 to vector<2x1024xf32>
    %53 = arith.subf %52, %51 : vector<2x1024xf32>
    %54 = arith.mulf %25, %53 : vector<2x1024xf32>
    %cst_25 = arith.constant 1.000000e+00 : f32
    %55 = vector.broadcast %cst_25 : f32 to vector<2x1024xf32>
    %56 = arith.addf %55, %54 : vector<2x1024xf32>
    %57 = arith.mulf %18, %56 : vector<2x1024xf32>
    %c0_26 = arith.constant 0 : index
    %c0_27 = arith.constant 0 : index
    %c0_28 = arith.constant 0 : index
    %58 = vector.load %arg5[%c0_26, %c0_27, %c0_28] : memref<1x8x1024xbf16, #tpu.memory_space<vmem>>, vector<1x8x1024xbf16>
    %59 = vector.shape_cast %58 : vector<1x8x1024xbf16> to vector<8x1024xbf16>
    %60 = arith.extf %59 : vector<8x1024xbf16> to vector<8x1024xf32>
    %cst_29 = arith.constant dense<0.000000e+00> : vector<2x8xf32>
    %61 = tpu.matmul %57, %60, %cst_29 {dimension_numbers = #tpu.dot_dimension_numbers<[1], [1], [0], [0], [0, 0, 1, 0], [], []>} : vector<2x1024xf32>, vector<8x1024xf32>, vector<2x8xf32> -> vector<2x8xf32>
    %c0_30 = arith.constant 0 : index
    %c0_31 = arith.constant 0 : index
    %c0_32 = arith.constant 0 : index
    %62 = vector.load %arg6[%c0_30, %c0_31, %c0_32] : memref<1x1x8xf32, #tpu.memory_space<vmem>>, vector<1x1x8xf32>
    %63 = vector.shape_cast %62 : vector<1x1x8xf32> to vector<1x8xf32>
    %64 = vector.broadcast %63 : vector<1x8xf32> to vector<2x8xf32>
    %65 = arith.addf %61, %64 : vector<2x8xf32>
    %c0_33 = arith.constant 0 : index
    %c0_34 = arith.constant 0 : index
    %c0_35 = arith.constant 0 : index
    %66 = vector.load %arg7[%c0_33, %c0_34, %c0_35] : memref<1x2x8xf32, #tpu.memory_space<vmem>>, vector<1x2x8xf32>
    %67 = vector.shape_cast %66 : vector<1x2x8xf32> to vector<2x8xf32>
    %68 = vector.shape_cast %65 : vector<2x8xf32> to vector<1x2x8xf32>
    tpu.vector_store %arg7[%c0_33, %c0_34, %c0_35], %68 {strides = array<i32>} : memref<1x2x8xf32, #tpu.memory_space<vmem>>, vector<1x2x8xf32>,
    return
  }
  func.func @transform_0(%arg0: i32) -> (i32, i32) {
    %c0_i32 = arith.constant 0 : i32
    %c0_i32_0 = arith.constant 0 : i32
    %c0_i32_1 = arith.constant 0 : i32
    return %c0_i32, %c0_i32_0 : i32, i32
  }
  func.func @transform_1(%arg0: i32) -> (i32, i32) {
    %c0_i32 = arith.constant 0 : i32
    %c0_i32_0 = arith.constant 0 : i32
    %c0_i32_1 = arith.constant 0 : i32
    return %c0_i32, %c0_i32_0 : i32, i32
  }
  func.func @transform_2(%arg0: i32) -> (i32, i32, i32) {
    %c0_i32 = arith.constant 0 : i32
    %c0_i32_0 = arith.constant 0 : i32
    %c0_i32_1 = arith.constant 0 : i32
    return %arg0, %c0_i32, %c0_i32_0 : i32, i32, i32
  }
  func.func @transform_3(%arg0: i32) -> (i32, i32, i32) {
    %c0_i32 = arith.constant 0 : i32
    %c0_i32_0 = arith.constant 0 : i32
    %c0_i32_1 = arith.constant 0 : i32
    return %arg0, %c0_i32, %c0_i32_0 : i32, i32, i32
  }
  func.func @transform_4(%arg0: i32) -> (i32, i32, i32) {
    %c0_i32 = arith.constant 0 : i32
    %c0_i32_0 = arith.constant 0 : i32
    %c0_i32_1 = arith.constant 0 : i32
    return %arg0, %c0_i32, %c0_i32_0 : i32, i32, i32
  }
  func.func @transform_5(%arg0: i32) -> (i32, i32, i32) {
    %c0_i32 = arith.constant 0 : i32
    %c0_i32_0 = arith.constant 0 : i32
    %c0_i32_1 = arith.constant 0 : i32
    return %arg0, %c0_i32, %c0_i32_0 : i32, i32, i32
  }
  func.func @transform_6(%arg0: i32) -> (i32, i32, i32) {
    %c0_i32 = arith.constant 0 : i32
    %c0_i32_0 = arith.constant 0 : i32
    %c0_i32_1 = arith.constant 0 : i32
    return %arg0, %c0_i32, %c0_i32_0 : i32, i32, i32
  }
}

</mosaic_0001>

<bundles_post_ra>
// kernel: tpu_custom_call.1
= control target key start
LH: loop header
LB: loop body
LE: loop exit
PB: predicated region body
PF: predicated region fallthrough
CT: control target
= control target key end

     0   :  { %s2228_s0 = inlined_call_operand.hbm [shape: f32[2,32], index: 0, kind: input, shape index: {}]   ;;  %s2229_s1 = inlined_call_operand.vmem [shape: f32[2,32], index: 1, kind: input, shape index: {}]   ;;  %s2230_s2 = inlined_call_operand.hbm [shape: bf16[2,32,1024], index: 2, kind: input, shape index: {}]   ;;  %s2231_s3 = inlined_call_operand.hbm [shape: f32[2,1,1024], index: 3, kind: input, shape index: {}]   ;;  %s2232_s4 = inlined_call_operand.hbm [shape: bf16[2,8,1024], index: 4, kind: input, shape index: {}]   ;;  %s2233_s5 = inlined_call_operand.vmem [shape: f32[2,1,8], index: 5, kind: input, shape index: {}]   ;;  %s2234_s6 = inlined_call_operand.hbm [shape: f32[2,2,8], index: 6, kind: output, shape index: {}]  }
   0x1   :  { %2248 = sst [smem:[#allocation18_spill]] %s2230_s2 }
   0x2   :  { %11 = vsyncpa [#allocation3], 0 }
   0x3   :  { %12 = vsyncpa [#allocation6], 0 }
   0x4   :  { %14 = vsyncpa [#allocation6 + $0x1], 0 }
   0x5   :  { %15 = vsyncpa [#allocation9], 0 }
   0x6   :  { %17 = vsyncpa [#allocation9 + $0x1], 0 }
   0x7   :  { %18 = vsyncpa [#allocation4], 0 }
   0x8   :  { %20 = vsyncpa [#allocation4 + $0x1], 0  ;;  %s1747_s21 = smov 0   ;;  %s1749_s22 = smov 0  }
   0x9   :  { %s1751_s23 = smov 0   ;;  %s1753_s24 = smov 0  }
   0xa LB: > { %2249 = sst [smem:[#allocation15_spill]] %s1697_s23  ;;  %s1768_s25 = sadd.s32 1, %s1701_s24   ;;  %s1701_s24 = sphi %s1753_s24, %s2272_s24   ;;  %s1697_s23 = sphi %s1751_s23, %s2277_s23   ;;  %s1693_s22 = sphi %s1749_s22, %s2276_s22   ;;  %s1689_s21 = sphi %s1747_s21, %s2275_s21  }
   0xb   : > { %2250 = sst [smem:[#allocation16_spill]] %s1768_s25  ;;  %s75_s26 = sadd.s32 1, %s1697_s23 }
   0xc   : > { %s72_s27 = ssub.s32 %s1701_s24, %s1768_s25  ;;  %p2235_p0 = scmp.ne.s32.totalorder %s1697_s23, %s1693_s22 }
   0xd   : > { %p73_p1 = scmp.eq.s32.totalorder %s72_s27, 0  ;;  %p83_p2 = scmp.eq.s32.totalorder %s1701_s24, 0 }
   0xe   : > { %p1437_p4 = scmp.lt.s32.totalorder %s1701_s24, 2  ;;  %s230_s29 = sand.u32 1, %s1701_s24  }
   0xf   : > { %s1779_s28 = scalar_select %p73_p1, %s1697_s23, %s75_s26  }
  0x10   : > { %p84_p5 = por %p83_p2, %p2235_p0  ;;  %s1786_s30 = sand.u32 1, %s1697_s23  }
  0x11   : > { %2251 = sst [smem:[#allocation17_spill]] %s1779_s28  ;;  %s1356_s7 = sshll.u32 %s1786_s30, 7 }
  0x12   : > { %s1396_s8 = sshll.u32 %s1701_s24, 11  ;;  %s2252_s2 = sld [smem:[#allocation18_spill]] }
  0x13   : > { %s234_s12 = scalar_lea.vmem [#allocation5], %s1356_s7  ;;  %p1795_p6 = pnand %p1437_p4, %p84_p5 }
  0x14   : > { %s241_s13 = sshll.u32 %s234_s12, 4  ;;  %s1801_s15 = scalar_lea.sflag [#allocation6], %s230_s29  ;;  %s1799_s13 = int_to_ptr.vmem [resolvable:$true] %s241_s13 }
  0x15   : > { %s2253_s14 = scalar_select %p1795_p6, 1, 0 }
  0x16   : > { %p1807_p8 = pneg %p1795_p6 }
  0x18   : > { %s1793_s11 = scalar_lea.hbm %s2252_s2, %s1396_s8  ;;  %s1514_s20 = scalar_lea.hbm %s2252_s2, 4096 }
  0x19   : > { %s1509_s16 = scalar_lea.hbm %s1793_s11, 2048  ;;  %p1515_p11 = scmp.lt.u32.totalorder %s1793_s11, %s2252_s2 }
  0x1a   : > { %p1510_p7 = scmp.ne.s32.totalorder %s1793_s11, %s1509_s16  ;;  %p1516_p12 = scmp.lt.u32.totalorder %s1514_s20, %s1509_s16 }
  0x1b   : > { %s2254_s17 = scalar_select %p1807_p8, 1, 0 }
  0x1c   : > { %p1512_p9 = pnand %p1807_p8, %p1510_p7  ;;  %p1517_p13 = por %p1516_p12, %p1515_p11 }
  0x1d   : > { %p1518_p1 = scmp.lt.u32.totalorder %s1509_s16, %s1793_s11 }
  0x1e   : > { %p1513_p10 = pneg %p1512_p9 }
  0x1f   : > { %p1519_p2 = por %p1518_p1, %p1517_p13 }
  0x21   : > { %p1520_p4 = pnand %p1519_p2, %p1513_p10 }
  0x23   : > { %1523 = shalt.err (!%p1520_p4)
}
  0x24   : > { %s1524_s29 = scalar_lea.vmem %s1799_s13, 2048  ;;  %s1703_s7 = smov [#allocation5]  }
  0x25   : > { %p1525_p5 = scmp.ne.s32.totalorder %s1799_s13, %s1524_s29  ;;  %s1529_s8 = sshll.u32 %s1703_s7, 4  ;;  %s1530_s8 = int_to_ptr.vmem [resolvable:$false] %s1529_s8 }
  0x26   : > { %s1531_s9 = scalar_lea.vmem %s1530_s8, 4096  ;;  %p1532_p3 = scmp.lt.s32.totalorder %s1799_s13, %s1530_s8 }
  0x27   : > { %p1527_p7 = pnand %p1525_p5, %p1807_p8  ;;  %p1533_p0 = scmp.lt.s32.totalorder %s1531_s9, %s1524_s29 }
  0x29   : > { %p1528_p9 = pneg %p1527_p7  ;;  %p1534_p11 = por %p1533_p0, %p1532_p3 }
  0x2b   : > { %p1535_p12 = pnand %p1534_p11, %p1528_p9 }
  0x2d   : > { %1538 = shalt.err (!%p1535_p12)
}
  0x2e   : > { %s1704_s10 = smov 512   ;;  %s1705_s12 = smov 32  }
  0x2f   : > { %1425 = dma.hbm_to_vmem [thread:$0]  (!%p1795_p6), %s1793_s11, 2048, %s1799_s13, %s1801_s15, %s1704_s10, %s1704_s10, %s1705_s12  }
  0x30   : > { %s1832_s16 = sadd.s32 4294967295, %s1701_s24   ;;  %s1352_s18 = sadd.s32 4294967294, %s1701_s24  }
  0x31   : > { %p88_p0 = scmp.ne.s32.totalorder %s1693_s22, %s1689_s21  ;;  %p2237_p3 = scmp.eq.s32.totalorder %s1832_s16, 0 }
  0x32   : > { %p190_p10 = scmp.eq.s32.totalorder %s1832_s16, 1  ;;  %p196_p13 = scmp.eq.s32.totalorder %s1352_s18, 1 }
  0x33   : > { %p1841_p1 = por %p2237_p3, %p88_p0  ;;  %p1353_p2 = scmp.ge.s32.totalorder %s1701_s24, 1 }
  0x34   : > { %p2256_p4 = scmp.ne.s32.totalorder %s1697_s23, %s1693_s22  ;;  %p1853_p7 = por %p196_p13, %p88_p0 }
  0x35   : > { %s2255_s19 = scalar_select %p1841_p1, 1, 0 }
  0x36   : > { %p1849_p5 = por %p190_p10, %p2256_p4  ;;  %p203_p9 = scmp.lt.s32.totalorder %s1701_s24, 3 }
  0x37   : > { %s2258_s13 = scalar_select %p1853_p7, 1, 0 }
  0x38   : > { %s2257_s11 = scalar_select %p1849_p5, 1, 0 }
  0x39   : > { %s1359_s20 = sshll.u32 %s1786_s30, 3  ;;  %p1859_p11 = pnand %p1353_p2, %p203_p9 }
  0x3a   : > { %s1706_s27 = smov [#allocation2]   ;;  %s1397_s7 = sshll.u32 %s1701_s24, 7 }
  0x3b   : > { %s2259_s26 = scalar_select %p1859_p11, 1, 0 }
  0x3c   : > { %s216_s29 = sshll.u32 %s1706_s27, 4  ;;  %p1418_p12 = pneg %p1859_p11  ;;  %s1863_s29 = int_to_ptr.vmem [resolvable:$true] %s216_s29 }
  0x3d   : > { %s1871_s10 = scalar_lea.hbm %s2231_s3, %s1397_s7  ;;  %s255_s12 = scalar_lea.vmem [#allocation7], %s1359_s20 }
  0x3e   : > { %s263_s18 = sshll.u32 %s255_s12, 4  ;;  %p1875_p0 = pnand %p1418_p12, %p2237_p3  ;;  %s264_s18 = int_to_ptr.vmem [resolvable:$true] %s263_s18 }
  0x3f   : > { %s1539_s27 = scalar_lea.hbm %s1871_s10, 128  ;;  %s1544_s9 = scalar_lea.hbm %s2231_s3, 256 }
  0x40   : > { %s2260_s2 = scalar_select %p1875_p0, 1, 0 }
  0x41   : > { %p1540_p10 = scmp.ne.s32.totalorder %s1871_s10, %s1539_s27  ;;  %p1545_p4 = scmp.lt.u32.totalorder %s1871_s10, %s2231_s3 }
  0x42   : > { %p1546_p9 = scmp.lt.u32.totalorder %s1544_s9, %s1539_s27  ;;  %p1548_p12 = scmp.lt.u32.totalorder %s1539_s27, %s1871_s10 }
  0x43   : > { %p1542_p13 = pnand %p1540_p10, %p1807_p8 }
  0x44   : > { %p1547_p7 = por %p1546_p9, %p1545_p4 }
  0x45   : > { %p1543_p2 = pneg %p1542_p13 }
  0x46   : > { %p1549_p3 = por %p1548_p12, %p1547_p7 }
  0x48   : > { %p1550_p5 = pnand %p1549_p3, %p1543_p2 }
  0x4a   : > { %1553 = shalt.err (!%p1550_p5)
}
  0x4b   : > { %s1554_s20 = scalar_lea.vmem %s264_s18, 128  ;;  %s1707_s12 = smov [#allocation7]  }
  0x4c   : > { %p1555_p1 = scmp.ne.s32.totalorder %s264_s18, %s1554_s20  ;;  %s1559_s25 = sshll.u32 %s1707_s12, 4  ;;  %s1560_s25 = int_to_ptr.vmem [resolvable:$false] %s1559_s25 }
  0x4d   : > { %s1561_s8 = scalar_lea.vmem %s1560_s25, 256  ;;  %p1562_p11 = scmp.lt.s32.totalorder %s264_s18, %s1560_s25 }
  0x4e   : > { %p1557_p10 = pnand %p1555_p1, %p1807_p8  ;;  %p1563_p0 = scmp.lt.s32.totalorder %s1561_s8, %s1554_s20 }
  0x50   : > { %p1558_p13 = pneg %p1557_p10  ;;  %p1564_p6 = por %p1563_p0, %p1562_p11 }
  0x52   : > { %p1565_p4 = pnand %p1564_p6, %p1558_p13 }
  0x54   : > { %1568 = shalt.err (!%p1565_p4)
}
  0x55   : > { %p2261_p9 = scmp.ne.s32.totalorder %s2253_s14, 0  ;;  %s1569_s27 = scalar_lea.hbm %s2228_s0, 32 }
  0x56   : > { %p1570_p3 = scmp.ne.s32.totalorder %s2228_s0, %s1569_s27  ;;  %p2262_p1 = scmp.ne.s32.totalorder %s2260_s2, 0 }
  0x57   : > { %1428 = dma.hbm_to_vmem [thread:$0]  (!%p2261_p9), %s1871_s10, 128, %s264_s18, %s1801_s15  }
  0x58   : > { %p1571_p5 = pneg %p2262_p1  ;;  %p1576_p6 = scmp.lt.u32.totalorder %s1569_s27, %s2228_s0 }
  0x5a   : > { %p1572_p7 = pnand %p1571_p5, %p1570_p3 }
  0x5c   : > { %p1573_p11 = pneg %p1572_p7 }
  0x5e   : > { %p1578_p0 = pnand %p1576_p6, %p1573_p11 }
  0x60   : > { %1581 = shalt.err (!%p1578_p0)
}
  0x61   : > { %s1582_s15 = scalar_lea.vmem %s1863_s29, 32  ;;  %p1590_p13 = scmp.lt.s32.totalorder %s1863_s29, %s1863_s29 }
  0x62   : > { %p1583_p2 = scmp.ne.s32.totalorder %s1863_s29, %s1582_s15  ;;  %p1591_p4 = scmp.lt.s32.totalorder %s1582_s15, %s1582_s15 }
  0x64   : > { %p1585_p12 = pnand %p1583_p2, %p1571_p5  ;;  %p1592_p9 = por %p1591_p4, %p1590_p13 }
  0x66   : > { %p1586_p10 = pneg %p1585_p12 }
  0x68   : > { %p1593_p8 = pnand %p1592_p9, %p1586_p10 }
  0x6a   : > { %1596 = shalt.err (!%p1593_p8)
}
  0x6b   : > { %1421 = dma.hbm_to_vmem [thread:$0]  (!%p2262_p1), %s2228_s0, 32, %s1863_s29, [#allocation3]  }
  0x6c   : > { %s1362_s12 = sshll.u32 %s1786_s30, 5  ;;  %s1398_s8 = sshll.u32 %s1701_s24, 9 }
  0x6d   : > { %s1923_s27 = scalar_lea.hbm %s2232_s4, %s1398_s8  ;;  %s274_s2 = scalar_lea.vmem [#allocation8], %s1362_s12 }
  0x6e   : > { %s282_s7 = sshll.u32 %s274_s2, 4  ;;  %s271_s9 = scalar_lea.sflag [#allocation9], %s1786_s30  ;;  %s283_s7 = int_to_ptr.vmem [resolvable:$true] %s282_s7 }
  0x6f   : > { %s1597_s25 = scalar_lea.hbm %s1923_s27, 512  ;;  %p2263_p9 = scmp.ne.s32.totalorder %s2254_s17, 0 }
  0x70   : > { %p1598_p8 = scmp.ne.s32.totalorder %s1923_s27, %s1597_s25  ;;  %s1602_s15 = scalar_lea.hbm %s2232_s4, 1024 }
  0x71   : > { %p1603_p5 = scmp.lt.u32.totalorder %s1923_s27, %s2232_s4  ;;  %p1604_p7 = scmp.lt.u32.totalorder %s1602_s15, %s1597_s25 }
  0x72   : > { %p1600_p3 = pnand %p1598_p8, %p2263_p9  ;;  %p1606_p6 = scmp.lt.u32.totalorder %s1597_s25, %s1923_s27 }
  0x73   : > { %p1605_p11 = por %p1604_p7, %p1603_p5 }
  0x74   : > { %p1601_p1 = pneg %p1600_p3 }
  0x75   : > { %p1607_p0 = por %p1606_p6, %p1605_p11 }
  0x77   : > { %p1608_p2 = pnand %p1607_p0, %p1601_p1 }
  0x79   : > { %1611 = shalt.err (!%p1608_p2)
}
  0x7a   : > { %s1612_s30 = scalar_lea.vmem %s283_s7, 512  ;;  %s1708_s12 = smov [#allocation8]  }
  0x7b   : > { %p1613_p12 = scmp.ne.s32.totalorder %s283_s7, %s1612_s30  ;;  %s1617_s8 = sshll.u32 %s1708_s12, 4  ;;  %s1618_s8 = int_to_ptr.vmem [resolvable:$false] %s1617_s8 }
  0x7c   : > { %s1619_s23 = scalar_lea.vmem %s1618_s8, 1024  ;;  %p1620_p4 = scmp.lt.s32.totalorder %s283_s7, %s1618_s8 }
  0x7d   : > { %p1615_p10 = pnand %p1613_p12, %p2263_p9  ;;  %p1621_p8 = scmp.lt.s32.totalorder %s1619_s23, %s1612_s30 }
  0x7f   : > { %p1616_p13 = pneg %p1615_p10  ;;  %p1622_p3 = por %p1621_p8, %p1620_p4 }
  0x81   : > { %p1623_p5 = pnand %p1622_p3, %p1616_p13 }
  0x83   : > { %1626 = shalt.err (!%p1623_p5)
}
  0x84   : > { %p2264_p7 = scmp.ne.s32.totalorder %s2253_s14, 0  ;;  %p2265_p1 = scmp.ne.s32.totalorder %s2259_s26, 0 }
  0x85   : > { %p2266_p11 = scmp.eq.s32.totalorder (!%p2265_p1), %s1832_s16, 0 }
  0x86   : > { %1431 = dma.hbm_to_vmem [thread:$0]  (!%p2264_p7), %s1923_s27, 512, %s283_s7, %s271_s9  }
  0x87   : > { %297 = sbr.rel (%p2265_p1) target bundleno = 681 (0x2a9), region = 44 }
  0x8e   : > { %1672 = dma.done.wait (%p2266_p11), [#allocation3], 32   ;;  %p2267_p9 = pmov %p2266_p11 }
  0x8f   : > { %s303_s17 = sand.u32 1, %s1832_s16   ;;  %s1951_s28 = sand.u32 1, %s1693_s22  }
  0x90   : > { %1674 = vsyncadd (%p2267_p9), [#allocation3], 4294967264  ;;  %s1367_s2 = sshll.u32 %s1951_s28, 7  ;;  %s304_s14 = scalar_lea.sflag [#allocation6], %s303_s17 }
  0x91   : > { %s1954_s25 = scalar_lea.vmem [#allocation5], %s1367_s2  ;;  %p2268_p6 = scmp.ne.s32.totalorder %s2255_s19, 0 }
  0x93   : > { %1676 = dma.done.wait (%p2268_p6), %s304_s14, 2176  }
  0x94   : > { %1678 = vsyncadd (%p2268_p6), %s304_s14, 4294965120  ;;  %s1368_s26 = sshll.u32 %s1951_s28, 3  ;;  %s1369_s27 = sshll.u32 %s1951_s28, 5 }
  0x95   : > { %s1962_s7 = scalar_lea.vmem [#allocation7], %s1368_s26  ;;  %s322_s9 = scalar_lea.sflag [#allocation9], %s1951_s28 }
  0x96   : > { %s1965_s29 = scalar_lea.vmem [#allocation8], %s1369_s27 }
  0x97   : > { %1680 = dma.done.wait (%p2268_p6), %s322_s9, 512  }
  0x98   : > { %1682 = vsyncadd (%p2268_p6), %s322_s9, 4294966784  ;;  %s371_s20 = scvt.s32.f32 %s1832_s16  ;;  %v1709_v0 = vmov 0   ;;  %v381_v1 = vld [vmem:[%s1954_s25] sm:$0xff]  ;;  %v383_v3 = vld [vmem:[%s1954_s25 + $0x10] sm:$0xff]  ;;  %vm519_vm0 = vcmask 261120   ;;  %v399_v46 = vlaneseq  ;;  %p367_p0 = scmp.lt.s32.totalorder %s1832_s16, 1 }
  0x99   : > { %555 = vmatprep.mubr.bf16.mxu1 %v1709_v0  ;;  %637 = vmatprep.mubr.bf16.mxu0 %v1709_v0  ;;  %v385_v2 = vld [vmem:[%s1954_s25 + $0x20] sm:$0xff]  ;;  %v387_v6 = vld [vmem:[%s1954_s25 + $0x30] sm:$0xff]  ;;  %v373_v16 = vld [vmem:[#allocation2] sm:$0x3]  ;;  %s1370_s30 = sshll.u32 %s1951_s28, 1  ;;  %s1393_s17 = sshll.u32 %s1832_s16, 5 }
  0x9a   : > { %s372_s15 = ssub.f32 1.0, %s371_s20  ;;  %v1372_v5 = vcombine.high %v381_v1, %v385_v2  ;;  %v1371_v7 = vcombine.low %v381_v1, %v385_v2  ;;  %v389_v8 = vld [vmem:[%s1954_s25 + $0x40] sm:$0xff]  ;;  %v377_v10 = vstv %s371_s20  ;;  %v1376_v11 = vcombine.high %v383_v3, %v387_v6  ;;  %v391_v14 = vld [vmem:[%s1954_s25 + $0x50] sm:$0xff]  ;;  %v376_v19 = vld [vmem:[%s2229_s1] sm:$0x3]  ;;  %s366_s2 = scalar_lea.vmem [#allocation10], %s1370_s30 }
  0x9b   : > { %v393_v9 = vld [vmem:[%s1954_s25 + $0x60] sm:$0xff]  ;;  %v1375_v12 = vcombine.low %v383_v3, %v387_v6  ;;  %v395_v15 = vld [vmem:[%s1954_s25 + $0x70] sm:$0xff]  ;;  %v382_v20 = vld [vmem:[%s1954_s25 + $0x8] sm:$0xff]  ;;  %v378_v23 = vmul.f32 %v377_v10, %v376_v19  ;;  %v400_v47 = vshrl.u32 %v399_v46, 7  ;;  %s368_s18 = scalar_select %p367_p0, %s1832_s16, 1  ;;  %vm1202_vm9 = vcmask 58368  }
  0x9c   : > { %v374_v4 = vstv %s372_s15  ;;  %v1380_v13 = vcombine.high %v389_v8, %v393_v9  ;;  %523 = vmatprep.subr.bf16.mxu1 %v1372_v5  ;;  %v1384_v17 = vcombine.high %v391_v14, %v395_v15  ;;  %v386_v21 = vld [vmem:[%s1954_s25 + $0x28] sm:$0xff]  ;;  %605 = vmatprep.subr.bf16.mxu0 %v1376_v11  ;;  %v1379_v22 = vcombine.low %v389_v8, %v393_v9  ;;  %v384_v32 = vld [vmem:[%s1954_s25 + $0x18] sm:$0xff]  ;;  %v903_v41 = vld [vmem:[%s1965_s29] sm:$0xff]  ;;  %s1218_s14 = sshll.u32 %s366_s2, 4  ;;  %s2184_s27 = scalar_lea.hbm %s2234_s6, %s1393_s17  ;;  %s2186_s14 = int_to_ptr.vmem [resolvable:$true] %s1218_s14 }
  0x9d   : > { %v375_v18 = vmul.f32 %v374_v4, %v373_v16  ;;  %524 = vmatpush1.bf16.msra.mxu1 %v1371_v7  ;;  %606 = vmatpush1.bf16.msra.mxu0 %v1375_v12  ;;  %v1383_v24 = vcombine.low %v391_v14, %v395_v15  ;;  %v1374_v25 = vcombine.high %v382_v20, %v386_v21  ;;  %v390_v27 = vld [vmem:[%s1954_s25 + $0x48] sm:$0xff]  ;;  %v388_v33 = vld [vmem:[%s1954_s25 + $0x38] sm:$0xff]  ;;  %v908_v42 = vunpack.c.h.bf16 %v903_v41  ;;  %s369_s23 = scalar_lea.vmem %s2233_s5, %s368_s18  ;;  %s1627_s9 = scalar_lea.vmem %s2186_s14, 32 }
  0x9e   : > { %525 = vmatprep.subr.bf16.mxu1 %v1380_v13  ;;  %607 = vmatprep.subr.bf16.mxu0 %v1384_v17  ;;  %v394_v28 = vld [vmem:[%s1954_s25 + $0x68] sm:$0xff]  ;;  %v1373_v30 = vcombine.low %v382_v20, %v386_v21  ;;  %v1378_v35 = vcombine.high %v384_v32, %v388_v33  ;;  %v392_v36 = vld [vmem:[%s1954_s25 + $0x58] sm:$0xff]  ;;  %v1377_v38 = vcombine.low %v384_v32, %v388_v33  ;;  %v907_v43 = vunpack.c.l.bf16 %v903_v41  ;;  %p1628_p2 = scmp.ne.s32.totalorder %s2186_s14, %s1627_s9  ;;  %p2269_p12 = scmp.ne.s32.totalorder %s2257_s11, 0 }
  0x9f   : > { %v379_v26 = vadd.f32 %v378_v23, %v375_v18  ;;  %v1382_v31 = vcombine.high %v390_v27, %v394_v28  ;;  %v1381_v34 = vcombine.low %v390_v27, %v394_v28  ;;  %v396_v37 = vld [vmem:[%s1954_s25 + $0x78] sm:$0xff]  ;;  %v401_v48 = vsub.s32 0, %v400_v47  ;;  %v397_v49 = vld [vmem:[%s1962_s7] sm:$0xff]  ;;  %s1205_s7 = scalar_lea.sflag [#allocation4], %s1951_s28  ;;  %s1711_s16 = smov [#allocation10]  }
  0xa0   : > { %v1386_v39 = vcombine.high %v392_v36, %v396_v37  ;;  %v1385_v40 = vcombine.low %v392_v36, %v396_v37  ;;  %v2001_v44 = vld [vmem:[%s1965_s29 + $0x8] sm:$0xff]  ;;  %v417_v50 = vsub.s32 4, %v400_v47  ;;  %v405_v51 = vsub.s32 1, %v400_v47  ;;  %p1629_p10 = pnand %p1628_p2, %p2269_p12 }
  0xa1   : > { %526 = vmatpush1.bf16.msra.mxu1 %v1379_v22  ;;  %v380_v29 = vpack.c.bf16 %v379_v26, %v379_v26  ;;  %608 = vmatpush1.bf16.msra.mxu0 %v1383_v24  ;;  %v910_v45 = vunpack.c.h.bf16 %v2001_v44  ;;  %v421_v52 = vsub.s32 5, %v400_v47  ;;  %v402_v53 = vrot.slane %v397_v49, %v401_v48 }
  0xa2   : > { %564 = vmatprep.subr.bf16.mxu1 %v1374_v25  ;;  %922 = vmatprep.subr.mxu0 %v908_v42  ;;  %v418_v54 = vrot.slane %v397_v49, %v417_v50  ;;  %v406_v55 = vrot.slane %v397_v49, %v405_v51  ;;  %v409_v9 = vsub.s32 2, %v400_v47  ;;  %v413_v11 = vsub.s32 3, %v400_v47  ;;  %p1630_p13 = pneg %p1629_p10 }
  0xa3   : > { %v422_v56 = vrot.slane %v397_v49, %v421_v52  ;;  %v425_v20 = vsub.s32 6, %v400_v47 }
  0xa4   : > { %1387 = vmatmul.mubr.msk.bf16.vlgmr.msra.gmra.mrb[0].mxu1 %vm519_vm0, %v380_v29  ;;  %1389 = vmatmul.mubr.msk.bf16.vlgmr.msra.gmra.mrb[0].mxu0 %vm519_vm0, %v380_v29  ;;  %v410_v18 = vrot.slane %v397_v49, %v409_v9  ;;  %v414_v23 = vrot.slane %v397_v49, %v413_v11 }
  0xa5   : > { %565 = vmatpush1.bf16.msra.mxu1 %v1373_v30  ;;  %596 = vmatprep.mubr.bf16.mxu1 %v1709_v0  ;;  %v426_v30 = vrot.slane %v397_v49, %v425_v20 }
  0xa6   : > { %566 = vmatprep.subr.bf16.mxu1 %v1382_v31  ;;  %v429_v31 = vsub.s32 7, %v400_v47 }
  0xa8   : > { %v430_v41 = vrot.slane %v397_v49, %v429_v31 }
  0xa9   : > { %567 = vmatpush1.bf16.msra.mxu1 %v1381_v34 }
  0xaa   : > { %646 = vmatprep.subr.bf16.mxu1 %v1378_v35  ;;  %923 = vmatpush1.xpose.msra.mxu0 %v907_v43 }
  0xab   : > { %992 = vmatprep.subr.mxu0 %v910_v45 }
  0xac   : > { %1388 = vmatmul.mubr.msk.bf16.vlgmr.msra.gmra.mrb[4].mxu1 %vm519_vm0, %v380_v29 }
  0xad   : > { %647 = vmatpush1.bf16.msra.mxu1 %v1377_v38  ;;  %678 = vmatprep.mubr.bf16.mxu1 %v1709_v0 }
  0xae   : > { %648 = vmatprep.subr.bf16.mxu1 %v1386_v39 }
  0xb1   : > { %649 = vmatpush1.bf16.msra.mxu1 %v1385_v40 }
  0xb4   : > { %1390 = vmatmul.mubr.msk.bf16.vlgmr.msra.gmra.mrb[8].mxu1 %vm519_vm0, %v380_v29 }
 0x177   : > { %v557_v57 = vpop.f32.mrb[0].mxu1  ;;  %v639_v59 = vpop.f32.mrb[0].mxu0 }
 0x178   : > { %v2005_v58 = vadd.f32 %v557_v57, %v402_v53  ;;  %v559_v60 = vpop.f32.mrb[1].mxu1  ;;  %v2007_v61 = vadd.f32 %v639_v59, %v418_v54  ;;  %v641_v63 = vpop.f32.mrb[1].mxu0 }
 0x179   : > { %v2009_v62 = vadd.f32 %v559_v60, %v406_v55  ;;  %v561_v0 = vpop.f32.mrb[2].mxu1  ;;  %v2014_v2 = vadd.f32 %v641_v63, %v422_v56  ;;  %v643_v4 = vpop.f32.mrb[2].mxu0  ;;  %v909_v63 = vunpack.c.l.bf16 %v2001_v44 }
 0x17a   : > { %v2012_v1 = vmul.f32 0.70710677, %v2005_v58  ;;  %v562_v3 = vpop.f32.mrb[3].mxu1  ;;  %v2017_v5 = vmul.f32 0.70710677, %v2007_v61  ;;  %v644_v12 = vpop.f32.mrb[3].mxu0 }
 0x17b   : > { %v2020_v6 = vmul.f32 0.70710677, %v2009_v62  ;;  %v2024_v8 = vmul.f32 0.70710677, %v2014_v2  ;;  %v2056_v57 = vmul.f32 0.5, %v2005_v58  ;;  %v2061_v0 = vld [vmem:[%s1965_s29 + $0x10] sm:$0xff] }
 0x17c   : > { %v719_v7 = vand.u32 2147483647, %v2012_v1  ;;  %v723_v10 = vand.u32 2147483647, %v2017_v5  ;;  %vm703_vm1 = vcmp.ge.f32.partialorder %v2012_v1, 0.0  ;;  %vm707_vm6 = vcmp.ge.f32.partialorder %v2017_v5, 0.0 }
 0x17d   : > { %v720_v15 = vand.u32 2147483647, %v2020_v6  ;;  %v2029_v17 = vand.u32 2147483647, %v2024_v8  ;;  %vm704_vm2 = vcmp.ge.f32.partialorder %v2020_v6, 0.0  ;;  %vm708_vm3 = vcmp.ge.f32.partialorder %v2024_v8, 0.0 }
 0x17e   : > { %v727_v13 = vmul.f32 0.3275911, %v719_v7  ;;  %v731_v14 = vmul.f32 0.3275911, %v723_v10  ;;  %v831_v34 = vsub.f32 0.0, %v719_v7  ;;  %v835_v38 = vsub.f32 0.0, %v723_v10 }
 0x17f   : > { %v598_v19 = vpop.f32.mrb[4].mxu1  ;;  %v728_v22 = vmul.f32 0.3275911, %v720_v15  ;;  %v732_v25 = vmul.f32 0.3275911, %v2029_v17  ;;  %v832_v50 = vsub.f32 0.0, %v720_v15  ;;  %v911_v44 = vunpack.c.l.bf16 %v2061_v0 }
 0x180   : > { %v735_v16 = vadd.f32 1.0, %v727_v13  ;;  %v739_v21 = vadd.f32 1.0, %v731_v14  ;;  %v600_v24 = vpop.f32.mrb[5].mxu1  ;;  %v2032_v29 = vadd.f32 %v598_v19, %v410_v18  ;;  %v839_v46 = vmul.f32 %v831_v34, %v719_v7 }
 0x181   : > { %v602_v26 = vpop.f32.mrb[6].mxu1  ;;  %v736_v27 = vadd.f32 1.0, %v728_v22  ;;  %v740_v32 = vadd.f32 1.0, %v732_v25  ;;  %v2034_v33 = vadd.f32 %v600_v24, %v414_v23  ;;  %v843_v54 = vmul.f32 %v835_v38, %v723_v10 }
 0x182   : > { %1477 = vrcp.f32 %v735_v16  ;;  %v603_v28 = vpop.f32.mrb[7].mxu1  ;;  %v2037_v35 = vmul.f32 0.70710677, %v2032_v29  ;;  %v847_v3 = vmul.f32 1.442695, %v839_v46  ;;  %v836_v7 = vsub.f32 0.0, %v2029_v17 }
 0x183   : > { %1479 = vrcp.f32 %v739_v21  ;;  %v2040_v36 = vmul.f32 0.70710677, %v2034_v33  ;;  %v840_v10 = vmul.f32 %v832_v50, %v720_v15  ;;  %v855_v13 = vmul.f32 1.442695, %v843_v54 }
 0x184   : > { %1481 = vrcp.f32 %v736_v27  ;;  %v721_v39 = vand.u32 2147483647, %v2037_v35  ;;  %v912_v16 = vunpack.c.h.bf16 %v2061_v0  ;;  %v2076_v19 = vmul.f32 0.5, %v2009_v62 }
 0x185   : > { %1483 = vrcp.f32 %v740_v32  ;;  %v722_v43 = vand.u32 2147483647, %v2040_v36  ;;  %v849_v27 = vmul.f32 1.442695, %v840_v10  ;;  %v844_v62 = vmul.f32 %v836_v7, %v2029_v17 }
 0x186   : > { %v729_v47 = vmul.f32 0.3275911, %v721_v39  ;;  %v833_v20 = vsub.f32 0.0, %v721_v39  ;;  %vm705_vm4 = vcmp.ge.f32.partialorder %v2037_v35, 0.0  ;;  %vm706_vm5 = vcmp.ge.f32.partialorder %v2040_v36, 0.0 }
 0x187   : > { %v680_v37 = vpop.f32.mrb[8].mxu1  ;;  %v730_v51 = vmul.f32 0.3275911, %v722_v43  ;;  %v834_v22 = vsub.f32 0.0, %v722_v43 }
 0x188   : > { %v2043_v40 = vadd.f32 %v680_v37, %v426_v30  ;;  %v682_v42 = vpop.f32.mrb[9].mxu1  ;;  %v737_v55 = vadd.f32 1.0, %v729_v47  ;;  %v841_v37 = vmul.f32 %v833_v20, %v721_v39 }
 0x189   : > { %v684_v45 = vpop.f32.mrb[10].mxu1  ;;  %v2051_v56 = vadd.f32 %v682_v42, %v430_v41  ;;  %v738_v60 = vadd.f32 1.0, %v730_v51  ;;  %v842_v38 = vmul.f32 %v834_v22, %v722_v43 }
 0x18a   : > { %v685_v48 = vpop.f32.mrb[11].mxu1  ;;  %v2047_v52 = vmul.f32 0.70710677, %v2043_v40  ;;  %1485 = vrcp.f32 %v737_v55  ;;  %v1710_v45 = vmov -1.0  }
 0x18b   : > { %1487 = vrcp.f32 %v738_v60  ;;  %v2071_v14 = vmul.f32 0.70710677, %v2051_v56  ;;  %v2089_v46 = vsel %vm703_vm1, 1.0, %v1710_v45  ;;  %v857_v48 = vmul.f32 1.442695, %v844_v62 }
 0x18c   : > { %v2049_v53 = vpop.eup %1477  ;;  %v2066_v11 = vand.u32 2147483647, %v2047_v52  ;;  %1489 = vpow2.f32 %v847_v3  ;;  %v853_v60 = vmul.f32 1.442695, %v842_v38  ;;  %v714_v36 = vsel %vm706_vm5, 1.0, %v1710_v45 }
 0x18d   : > { %v2053_v49 = vpop.eup %1479  ;;  %v759_v59 = vmul.f32 1.0614054, %v2049_v53  ;;  %v726_v23 = vand.u32 2147483647, %v2071_v14  ;;  %1491 = vpow2.f32 %v855_v13  ;;  %vm710_vm7 = vcmp.ge.f32.partialorder %v2071_v14, 0.0 }
 0x18e   : > { %v763_v4 = vmul.f32 1.0614054, %v2053_v49  ;;  %v2068_v58 = vpop.eup %1481  ;;  %v733_v15 = vmul.f32 0.3275911, %v2066_v11  ;;  %v837_v10 = vsub.f32 0.0, %v2066_v11  ;;  %vm709_vm8 = vcmp.ge.f32.partialorder %v2047_v52, 0.0 }
 0x18f   : > { %v767_v9 = vadd.f32 -1.4531521, %v759_v59  ;;  %v760_v24 = vmul.f32 1.0614054, %v2068_v58  ;;  %v2082_v25 = vpop.eup %1483  ;;  %v734_v30 = vmul.f32 0.3275911, %v726_v23 }
 0x190   : > { %v771_v12 = vadd.f32 -1.4531521, %v763_v4  ;;  %v741_v28 = vadd.f32 1.0, %v733_v15  ;;  %v764_v42 = vmul.f32 1.0614054, %v2082_v25  ;;  %v838_v13 = vsub.f32 0.0, %v726_v23 }
 0x191   : > { %v775_v18 = vmul.f32 %v2049_v53, %v767_v9  ;;  %v768_v34 = vadd.f32 -1.4531521, %v760_v24  ;;  %v742_v41 = vadd.f32 1.0, %v734_v30  ;;  %v851_v59 = vmul.f32 1.442695, %v841_v37 }
 0x192   : > { %v779_v21 = vmul.f32 %v2053_v49, %v771_v12  ;;  %1493 = vrcp.f32 %v741_v28  ;;  %v772_v50 = vadd.f32 -1.4531521, %v764_v42  ;;  %v712_v28 = vsel %vm704_vm2, 1.0, %v1710_v45 }
 0x193   : > { %v783_v26 = vadd.f32 1.4214138, %v775_v18  ;;  %1495 = vpow2.f32 %v849_v27  ;;  %v776_v1 = vmul.f32 %v2068_v58, %v768_v34 }
 0x194   : > { %v787_v32 = vadd.f32 1.4214138, %v779_v21  ;;  %v2092_v17 = vpop.eup %1485  ;;  %1497 = vrcp.f32 %v742_v41  ;;  %v780_v4 = vmul.f32 %v2082_v25, %v772_v50  ;;  %v846_v41 = vmul.f32 %v838_v13, %v726_v23 }
 0x195   : > { %v791_v31 = vmul.f32 %v2049_v53, %v783_v26  ;;  %v2095_v39 = vpop.eup %1487  ;;  %v761_v54 = vmul.f32 1.0614054, %v2092_v17  ;;  %v784_v55 = vadd.f32 1.4214138, %v776_v1  ;;  %1499 = vpow2.f32 %v857_v48 }
 0x196   : > { %v795_v51 = vmul.f32 %v2053_v49, %v787_v32  ;;  %v762_v3 = vmul.f32 1.0614054, %v2095_v39  ;;  %v788_v20 = vadd.f32 1.4214138, %v780_v4  ;;  %v1490_v15 = vpop.eup %1489  ;;  %1501 = vpow2.f32 %v851_v59 }
 0x197   : > { %v799_v47 = vadd.f32 -0.28449672, %v791_v31  ;;  %v769_v9 = vadd.f32 -1.4531521, %v761_v54  ;;  %v792_v12 = vmul.f32 %v2068_v58, %v784_v55  ;;  %v2106_v27 = vpop.eup %1491  ;;  %1503 = vpow2.f32 %v853_v60 }
 0x198   : > { %v770_v18 = vadd.f32 -1.4531521, %v762_v3  ;;  %v803_v22 = vadd.f32 -0.28449672, %v795_v51  ;;  %v796_v30 = vmul.f32 %v2082_v25, %v788_v20 }
 0x199   : > { %v807_v43 = vmul.f32 %v2049_v53, %v799_v47  ;;  %v777_v24 = vmul.f32 %v2092_v17, %v769_v9  ;;  %v800_v26 = vadd.f32 -0.28449672, %v792_v12  ;;  %v861_v9 = vmul.f32 1.442695, %v846_v41 }
 0x19a   : > { %v778_v62 = vmul.f32 %v2095_v39, %v770_v18  ;;  %v804_v47 = vadd.f32 -0.28449672, %v796_v30  ;;  %v811_v1 = vmul.f32 %v2053_v49, %v803_v22 }
 0x19b   : > { %v815_v7 = vadd.f32 0.2548296, %v807_v43  ;;  %v785_v34 = vadd.f32 1.4214138, %v777_v24  ;;  %v808_v37 = vmul.f32 %v2068_v58, %v800_v26 }
 0x19c   : > { %v2113_v31 = vpop.eup %1493  ;;  %v786_v42 = vadd.f32 1.4214138, %v778_v62  ;;  %v812_v55 = vmul.f32 %v2082_v25, %v804_v47  ;;  %v819_v12 = vadd.f32 0.2548296, %v811_v1 }
 0x19d   : > { %v823_v21 = vmul.f32 %v2049_v53, %v815_v7  ;;  %v845_v53 = vmul.f32 %v837_v10, %v2066_v11  ;;  %v765_v38 = vmul.f32 1.0614054, %v2113_v31  ;;  %v1496_v6 = vpop.eup %1495  ;;  %v793_v48 = vmul.f32 %v2092_v17, %v785_v34 }
 0x19e   : > { %v816_v50 = vadd.f32 0.2548296, %v808_v37  ;;  %v2121_v43 = vpop.eup %1497  ;;  %v794_v54 = vmul.f32 %v2095_v39, %v786_v42  ;;  %v820_v60 = vadd.f32 0.2548296, %v812_v55 }
 0x19f   : > { %v863_v32 = vmul.f32 %v1490_v15, %v823_v21  ;;  %v773_v11 = vadd.f32 -1.4531521, %v765_v38  ;;  %v801_v23 = vadd.f32 -0.28449672, %v793_v48  ;;  %v859_v59 = vmul.f32 1.442695, %v845_v53  ;;  %v1500_v15 = vpop.eup %1499 }
 0x1a0   : > { %v824_v3 = vmul.f32 %v2068_v58, %v816_v50  ;;  %v766_v4 = vmul.f32 1.0614054, %v2121_v43  ;;  %v802_v10 = vadd.f32 -0.28449672, %v794_v54  ;;  %v828_v58 = vmul.f32 %v2082_v25, %v820_v60 }
 0x1a1   : > { %v871_v51 = vsub.f32 1.0, %v863_v32  ;;  %v781_v7 = vmul.f32 %v2113_v31, %v773_v11  ;;  %v809_v13 = vmul.f32 %v2092_v17, %v801_v23  ;;  %v1502_v32 = vpop.eup %1501  ;;  %1505 = vpow2.f32 %v859_v59 }
 0x1a2   : > { %v864_v18 = vmul.f32 %v1496_v6, %v824_v3  ;;  %v774_v20 = vadd.f32 -1.4531521, %v766_v4  ;;  %v810_v24 = vmul.f32 %v2095_v39, %v802_v10  ;;  %v868_v37 = vmul.f32 %v1500_v15, %v828_v58  ;;  %v1504_v1 = vpop.eup %1503 }
 0x1a3   : > { %v879_v21 = vmul.f32 %v871_v51, %v2089_v46  ;;  %v789_v22 = vadd.f32 1.4214138, %v781_v7  ;;  %v817_v26 = vadd.f32 0.2548296, %v809_v13  ;;  %1507 = vpow2.f32 %v861_v9 }
 0x1a4   : > { %v872_v62 = vsub.f32 1.0, %v864_v18  ;;  %v782_v30 = vmul.f32 %v2121_v43, %v774_v20  ;;  %v818_v53 = vadd.f32 0.2548296, %v810_v24  ;;  %v827_v25 = vmul.f32 %v2053_v49, %v819_v12 }
 0x1a5   : > { %v797_v34 = vmul.f32 %v2113_v31, %v789_v22  ;;  %v825_v38 = vmul.f32 %v2092_v17, %v817_v26  ;;  %v887_v42 = vadd.f32 1.0, %v879_v21  ;;  %v876_v51 = vsub.f32 1.0, %v868_v37  ;;  %v906_v21 = vld [vmem:[%s1965_s29 + $0x18] sm:$0xff]  ;;  %s1631_s29 = sshll.u32 %s1711_s16, 4  ;;  %s1632_s29 = int_to_ptr.vmem [resolvable:$false] %s1631_s29 }
 0x1a6   : > { %v880_v46 = vmul.f32 %v872_v62, %v712_v28  ;;  %v790_v41 = vadd.f32 1.4214138, %v782_v30  ;;  %v826_v6 = vmul.f32 %v2095_v39, %v818_v53  ;;  %v716_v54 = vsel %vm708_vm3, 1.0, %v1710_v45  ;;  %s1633_s20 = scalar_lea.vmem %s1632_s29, 64  ;;  %p1634_p4 = scmp.lt.s32.totalorder %s2186_s14, %s1632_s29 }
 0x1a7   : > { %v805_v47 = vadd.f32 -0.28449672, %v797_v34  ;;  %v865_v48 = vmul.f32 %v1502_v32, %v825_v38  ;;  %v713_v49 = vsel %vm705_vm4, 1.0, %v1710_v45  ;;  %v895_v59 = vmul.f32 %v887_v42, %v2056_v57  ;;  %p1635_p8 = scmp.lt.s32.totalorder %s1633_s20, %s1627_s9 }
 0x1a8   : > { %v888_v50 = vadd.f32 1.0, %v880_v46  ;;  %v798_v11 = vmul.f32 %v2121_v43, %v790_v41  ;;  %v866_v28 = vmul.f32 %v1504_v1, %v826_v6  ;;  %v867_v3 = vmul.f32 %v2106_v27, %v827_v25 }
 0x1a9   : > { %v813_v17 = vmul.f32 %v2113_v31, %v805_v47  ;;  %v873_v39 = vsub.f32 1.0, %v865_v48  ;;  %v884_v9 = vmul.f32 %v876_v51, %v716_v54  ;;  %v914_v30 = vunpack.c.h.bf16 %v906_v21  ;;  %p1636_p3 = por %p1635_p8, %p1634_p4 }
 0x1aa   : > { %v896_v55 = vmul.f32 %v888_v50, %v2076_v19  ;;  %v806_v23 = vadd.f32 -0.28449672, %v798_v11  ;;  %v874_v8 = vsub.f32 1.0, %v866_v28  ;;  %v690_v19 = vmul.f32 0.5, %v2034_v33 }
 0x1ab   : > { %v821_v4 = vadd.f32 0.2548296, %v813_v17  ;;  %v881_v7 = vmul.f32 %v873_v39, %v713_v49  ;;  %v1506_v27 = vpop.eup %1505  ;;  %v875_v60 = vsub.f32 1.0, %v867_v3  ;;  %v892_v15 = vadd.f32 1.0, %v884_v9  ;;  %p1637_p5 = pnand %p1636_p3, %p1630_p13 }
 0x1ac   : > { %986 = vmatprep.mubr.f32.mxu0 %v896_v55  ;;  %v814_v10 = vmul.f32 %v2121_v43, %v806_v23  ;;  %v882_v35 = vmul.f32 %v874_v8, %v714_v36  ;;  %v689_v33 = vmul.f32 0.5, %v2032_v29  ;;  %v718_v29 = vsel %vm710_vm7, 1.0, %v1710_v45 }
 0x1ad   : > { %987 = vmatmul.mubr.f32.vlgmr.msra.gmra.mrb[4].mxu0 %v895_v59  ;;  %v889_v12 = vadd.f32 1.0, %v881_v7  ;;  %v829_v13 = vmul.f32 %v2113_v31, %v821_v4  ;;  %v1508_v20 = vpop.eup %1507  ;;  %v692_v31 = vmul.f32 0.5, %v2014_v2  ;;  %v691_v34 = vmul.f32 0.5, %v2007_v61  ;;  %v1391_v61 = vld [vmem:[%s369_s23] ss:$0 sm:$0xff] }
 0x1ae   : > { %993 = vmatpush1.xpose.msra.mxu0 %v909_v63  ;;  %v822_v57 = vadd.f32 0.2548296, %v814_v10  ;;  %v890_v18 = vadd.f32 1.0, %v882_v35  ;;  %v715_v63 = vsel %vm707_vm6, 1.0, %v1710_v45  ;;  %v717_v53 = vsel %vm709_vm8, 1.0, %v1710_v45 }
 0x1af   : > { %1062 = vmatprep.subr.mxu0 %v912_v16  ;;  %v883_v16 = vmul.f32 %v875_v60, %v715_v63  ;;  %v897_v26 = vmul.f32 %v889_v12, %v689_v33  ;;  %v869_v62 = vmul.f32 %v1506_v27, %v829_v13  ;;  %v694_v37 = vmul.f32 0.5, %v2051_v56 }
 0x1b0   : > { %v830_v22 = vmul.f32 %v2121_v43, %v822_v57  ;;  %v898_v24 = vmul.f32 %v890_v18, %v690_v19  ;;  %v900_v43 = vmul.f32 %v892_v15, %v692_v31  ;;  %v913_v38 = vunpack.c.l.bf16 %v906_v21 }
 0x1b1   : > { %v891_v5 = vadd.f32 1.0, %v883_v16  ;;  %v877_v2 = vsub.f32 1.0, %v869_v62  ;;  %v693_v25 = vmul.f32 0.5, %v2043_v40 }
 0x1b2   : > { %v870_v58 = vmul.f32 %v1508_v20, %v830_v22  ;;  %1056 = vmatprep.mubr.f32.mxu0 %v898_v24 }
 0x1b3   : > { %v899_v46 = vmul.f32 %v891_v5, %v691_v34  ;;  %v885_v41 = vmul.f32 %v877_v2, %v717_v53 }
 0x1b4   : > { %v878_v32 = vsub.f32 1.0, %v870_v58 }
 0x1b5   : > { %1057 = vmatmul.mubr.f32.vlgmr.msra.gmra.mrb[4].mxu0 %v897_v26  ;;  %v893_v52 = vadd.f32 1.0, %v885_v41 }
 0x1b6   : > { %1063 = vmatpush1.xpose.msra.mxu0 %v911_v44  ;;  %1126 = vmatprep.mubr.f32.mxu0 %v900_v43  ;;  %v886_v0 = vmul.f32 %v878_v32, %v718_v29 }
 0x1b7   : > { %1132 = vmatprep.subr.mxu0 %v914_v30  ;;  %v901_v47 = vmul.f32 %v893_v52, %v693_v25 }
 0x1b8   : > { %v894_v14 = vadd.f32 1.0, %v886_v0 }
 0x1ba   : > { %v902_v42 = vmul.f32 %v894_v14, %v694_v37 }
 0x1bd   : > { %1127 = vmatmul.mubr.f32.vlgmr.msra.gmra.mrb[4].mxu0 %v899_v46 }
 0x1be   : > { %1133 = vmatpush1.xpose.msra.mxu0 %v913_v38  ;;  %1196 = vmatprep.mubr.f32.mxu0 %v902_v42 }
 0x1c5   : > { %1197 = vmatmul.mubr.f32.vlgmr.msra.gmra.mrb[4].mxu0 %v901_v47 }
 0x298   : > { %v1198_v56 = vpop.f32.mrb[4].mxu0 }
 0x299   : > { %v1399_v45 = vadd.f32 %v1391_v61, %v1198_v56  ;;  %v1200_v6 = vpop.f32.mrb[5].mxu0 }
 0x29b   : > { %1203 = vst.msk [vmem:[%s366_s2] sm:$0x3] %vm1202_vm9, %v1399_v45 }
 0x29c   : > { %1640 = shalt.err (!%p1637_p5)
}
 0x29d   : > { %s1641_s28 = scalar_lea.hbm %s2184_s27, 32  ;;  %s1645_s10 = scalar_lea.hbm %s2234_s6, 64 }
 0x29e   : > { %p1642_p7 = scmp.ne.s32.totalorder %s2184_s27, %s1641_s28  ;;  %p1646_p9 = scmp.lt.u32.totalorder %s2184_s27, %s2234_s6 }
 0x29f   : > { %p1647_p6 = scmp.lt.u32.totalorder %s1645_s10, %s1641_s28  ;;  %p1649_p2 = scmp.lt.u32.totalorder %s1641_s28, %s2184_s27 }
 0x2a0   : > { %p1643_p1 = pnand %p1642_p7, %p2269_p12 }
 0x2a1   : > { %p1648_p0 = por %p1647_p6, %p1646_p9 }
 0x2a2   : > { %p1644_p11 = pneg %p1643_p1 }
 0x2a3   : > { %p1650_p10 = por %p1649_p2, %p1648_p0 }
 0x2a5   : > { %p1651_p13 = pnand %p1650_p10, %p1644_p11 }
 0x2a7   : > { %1654 = shalt.err (!%p1651_p13)
}
 0x2a8   : > { %1416 = dma.vmem_to_hbm [thread:$0]  (%p2269_p12), %s2186_s14, 32, %s2184_s27, %s1205_s7  }
 0x2a9 PF: > { %s1230_s12 = sand.u32 1, %s1689_s21   ;;  %p2270_p4 = scmp.ne.s32.totalorder %s2258_s13, 0 }
 0x2aa   : > { %p2271_p8 = scmp.ge.s32.totalorder %s1701_s24, 2  ;;  %s1231_s8 = scalar_lea.sflag [#allocation4], %s1230_s12 }
 0x2ac   : > { %p1433_p3 = pnand %p2271_p8, %p2270_p4 }
 0x2ae   : > { %1684 = dma.done.wait (!%p1433_p3), %s1231_s8, 32  }
 0x2af   : > { %1686 = vsyncadd (!%p1433_p3), %s1231_s8, 4294967264  ;;  %s2272_s24 = sld [smem:[#allocation16_spill]]  ;;  %s2273_s23 = sld [smem:[#allocation15_spill]] }
 0x2b0   : > { %s2274_s17 = sld [smem:[#allocation17_spill]]  ;;  %s2275_s21 = smov %s1693_s22 }
 0x2b5   : > { %p23_p5 = scmp.ge.s32.totalorder %s2272_s24, 4   ;;  %s2276_s22 = smov %s2273_s23 }
 0x2b6   : > { %s2277_s23 = smov %s2274_s17 }
 0x2b7   :  { %25 = sbr.rel (!%p23_p5) target bundleno = 10 (0xa), region = 121 }
 0x2be   :  { %1236 = vsyncpa [#allocation3], 1 }
 0x2bf   :  { %1238 = vsyncpa [#allocation3 + $0x1], 1 }
 0x2c0   :  { %1239 = vsyncpa [#allocation6], 1 }
 0x2c1   :  { %1241 = vsyncpa [#allocation6 + $0x1], 1 }
 0x2c2   :  { %1242 = vsyncpa [#allocation9], 1 }
 0x2c3   :  { %1244 = vsyncpa [#allocation9 + $0x1], 1 }
 0x2c4   :  { %1245 = vsyncpa [#allocation4], 1 }
 0x2c5   :  { %1247 = vsyncpa [#allocation4 + $0x1], 1 }

</bundles_post_ra>
